<compile_context>
chip_gen: v7x
topology: tpu7x:2x2x1
jax: 0.10.0
libtpu: 0.0.40
codegen_flags: <defaults>
</compile_context>

<pallas_src>
import functools

import jax
import jax.numpy as jnp
from jax.experimental import pallas as pl
from jax.experimental.pallas import tpu as pltpu

C = 128  # feature dim of fc_final_score = nn.Linear(128, 1)


def _score_regressor_kernel(x_ref, att_ref, w_ref, b_ref, o_ref,
                            m_acc, d_acc, n_acc, *, seq_len, block_seq):
    # x_ref, att_ref : (TR, TS, C) VMEM tile
    # w_ref          : (1, C)      VMEM (lane-dense Linear weight row)
    # b_ref          : (1, 1)      SMEM (Linear bias scalar)
    # o_ref          : (TR, 1)     VMEM
    # m_acc/d_acc/n_acc : (TR, C)  f32 VMEM scratch (online-softmax state over S)
    j = pl.program_id(1)

    @pl.when(j == 0)
    def _init():
        m_acc[...] = jnp.full_like(m_acc, -jnp.inf)
        d_acc[...] = jnp.zeros_like(d_acc)
        n_acc[...] = jnp.zeros_like(n_acc)

    att = att_ref[...].astype(jnp.float32)   # (TR, TS, C)
    x = x_ref[...].astype(jnp.float32)       # (TR, TS, C)

    if seq_len % block_seq != 0:
        # Partial boundary block along S: padded slots hold undefined data and
        # would corrupt VALID rows through the S-reduction, so mask them out.
        s_idx = jax.lax.broadcasted_iota(jnp.int32, (block_seq, C), 0)
        valid = (j * block_seq + s_idx) < seq_len            # (TS, C)
        att = jnp.where(valid[None, :, :], att, -jnp.inf)    # -> exp == 0
        x = jnp.where(valid[None, :, :], x, 0.0)             # avoid inf*0 = nan

    # Online softmax over S; normalization fused into the pooled sums so no
    # (TR, TS, C) softmax temporary is ever needed.
    m_blk = jnp.max(att, axis=1)                             # (TR, C)
    m_new = jnp.maximum(m_acc[...], m_blk)                   # (TR, C)
    scale = jnp.exp(m_acc[...] - m_new)                      # (TR, C); == 0 at j==0
    e = jnp.exp(att - m_new[:, None, :])                     # (TR, TS, C)
    d_acc[...] = scale * d_acc[...] + jnp.sum(e, axis=1)
    n_acc[...] = scale * n_acc[...] + jnp.sum(x * e, axis=1)
    m_acc[...] = m_new

    @pl.when(j == pl.num_programs(1) - 1)
    def _finalize():
        # Linear(128, 1): fold the softmax denominator into the weight row,
        # then VPU multiply + XLU lane reduce (no degenerate MXU dot and no
        # materialized `pooled` temporary).
        inv = pl.reciprocal(d_acc[...], approx=True)                  # EUP (free slot)
        w = w_ref[...].astype(jnp.float32)                            # (1, C)
        y = jnp.sum(n_acc[...] * (w * inv), axis=-1, keepdims=True)   # (TR, 1)
        o_ref[...] = (y + b_ref[0, 0]).astype(o_ref.dtype)


def _round_up(a, m):
    return (a + m - 1) // m * m


def _choose_blocks(R, S, itemsize, block_rows, block_seq):
    """~2 MiB per input block; >=2 row steps when possible (v7x megacore)."""
    TS_MAX = 512                  # multiple of 8; caps VMEM growth in S
    target_bytes = 2 << 20        # per-input block target (safe on v5e/v6e/v7x)
    if block_seq is not None:
        TS = block_seq
    else:
        TS = S if S <= TS_MAX else TS_MAX
    if block_rows is not None:
        TR = block_rows
    else:
        tr = max(8, (target_bytes // (TS * C * itemsize)) // 8 * 8)
        if R > 8:
            # Guarantee >= 2 grid steps over rows so both v7x TensorCores work.
            tr = min(tr, _round_up(pl.cdiv(R, 2), 8))
        TR = min(tr, _round_up(R, 8))
    return TR, TS


def score_regressor_forward(x, att, w, b, *, block_rows=None, block_seq=None):
    """x, att: (B, H, S, 128) f32 or bf16; w: (1, 128) PyTorch Linear weight; b: (1,)."""
    B, H, S, Cdim = x.shape
    assert Cdim == C, f"last dim must be {C}"
    assert att.shape == x.shape
    R = B * H
    itemsize = jnp.dtype(x.dtype).itemsize

    TR, TS = _choose_blocks(R, S, itemsize, block_rows, block_seq)

    x_r = x.reshape(R, S, C)          # leading-dim merge: no HBM copy
    att_r = att.reshape(R, S, C)
    w_row = w.reshape(1, C).astype(jnp.float32)   # lane-dense weight row
    b_s = b.reshape(1, 1).astype(jnp.float32)     # scalar bias in SMEM

    grid = (pl.cdiv(R, TR), pl.cdiv(S, TS))

    # Explicit VMEM budget: 2 inputs x 2 pipeline buffers + ~4x block of f32
    # temporaries (upcasts / exp) + online-softmax scratch; capped below v7x's
    # 64 MiB physical VMEM.
    block_in = TR * TS * C * itemsize
    block_f32 = TR * TS * C * 4
    scratch_bytes = 3 * TR * C * 4
    vmem_need = 4 * block_in + 4 * block_f32 + scratch_bytes + (2 << 20)
    vmem_limit = int(min(48 << 20, max(32 << 20, vmem_need)))

    kernel = functools.partial(_score_regressor_kernel, seq_len=S, block_seq=TS)

    out = pl.pallas_call(
        kernel,
        out_shape=jax.ShapeDtypeStruct((R, 1), jnp.float32),
        grid=grid,
        in_specs=[
            pl.BlockSpec((TR, TS, C), lambda i, j: (i, j, 0)),     # x tile
            pl.BlockSpec((TR, TS, C), lambda i, j: (i, j, 0)),     # att tile
            pl.BlockSpec((1, C), lambda i, j: (0, 0)),             # weight row
            pl.BlockSpec((1, 1), lambda i, j: (0, 0),
                         memory_space=pltpu.MemorySpace.SMEM),     # bias
        ],
        out_specs=pl.BlockSpec((TR, 1), lambda i, j: (i, 0)),
        scratch_shapes=[pltpu.VMEM((TR, C), jnp.float32)] * 3,
        compiler_params=pltpu.CompilerParams(
            dimension_semantics=("parallel", "arbitrary"),
            vmem_limit_bytes=vmem_limit,
        ),
    )(x_r, att_r, w_row, b_s)

    return out.reshape(B, H, 1)


def _reference(x, att, w, b):
    soft = jax.nn.softmax(att.astype(jnp.float32), axis=2)
    pooled = jnp.sum(x.astype(jnp.float32) * soft, axis=2)        # (B, H, C)
    return pooled @ w.reshape(1, C).T.astype(jnp.float32) + b     # (B, H, 1)


if __name__ == "__main__":
    key = jax.random.PRNGKey(0)
    kx, ka, kw, kb = jax.random.split(key, 4)

    # Deterministic Linear(128, 1) params (PyTorch-style uniform bound 1/sqrt(128))
    bound = 1.0 / jnp.sqrt(jnp.float32(C))
    w = jax.random.uniform(kw, (1, C), minval=-bound, maxval=bound, dtype=jnp.float32)
    b = jax.random.uniform(kb, (1,), minval=-bound, maxval=bound, dtype=jnp.float32)

    # Test 1: canonical small shapes, single grid step.
    B, H, S = 2, 4, 8
    x = jax.random.normal(kx, (B, H, S, C), dtype=jnp.float32)
    att = jax.random.normal(ka, (B, H, S, C), dtype=jnp.float32)
    out = jax.block_until_ready(score_regressor_forward(x, att, w, b))
    ref = _reference(x, att, w, b)
    assert out.shape == (B, H, 1), out.shape
    assert jnp.allclose(out, ref, atol=1e-3, rtol=1e-3), float(jnp.max(jnp.abs(out - ref)))

    # Test 2: multi-step row grid with a PARTIAL boundary block (R=12, TR=8) --
    # exercises the no-pad path (garbage tail rows are never written back).
    B2, H2 = 3, 4
    x2 = jax.random.normal(kx, (B2, H2, S, C), dtype=jnp.float32)
    att2 = jax.random.normal(ka, (B2, H2, S, C), dtype=jnp.float32)
    out2 = jax.block_until_ready(score_regressor_forward(x2, att2, w, b, block_rows=8))
    ref2 = _reference(x2, att2, w, b)
    assert out2.shape == (B2, H2, 1), out2.shape
    assert jnp.allclose(out2, ref2, atol=1e-3, rtol=1e-3), float(jnp.max(jnp.abs(out2 - ref2)))

    # Test 3: bf16 inputs (preferred caller dtype: halves HBM traffic; compute
    # stays f32 in-kernel).
    x3 = x.astype(jnp.bfloat16)
    att3 = att.astype(jnp.bfloat16)
    out3 = jax.block_until_ready(score_regressor_forward(x3, att3, w, b))
    ref3 = _reference(x3, att3, w, b)
    assert jnp.allclose(out3, ref3, atol=3e-2, rtol=3e-2), float(jnp.max(jnp.abs(out3 - ref3)))

    # Test 4: multi-step S grid with a partial (masked) S boundary block plus a
    # partial row block -- exercises the online-softmax accumulator path.
    S4 = 20
    x4 = jax.random.normal(kx, (B2, H2, S4, C), dtype=jnp.float32)
    att4 = jax.random.normal(ka, (B2, H2, S4, C), dtype=jnp.float32)
    out4 = jax.block_until_ready(
        score_regressor_forward(x4, att4, w, b, block_rows=8, block_seq=8))
    ref4 = _reference(x4, att4, w, b)
    assert out4.shape == (B2, H2, 1), out4.shape
    assert jnp.allclose(out4, ref4, atol=1e-3, rtol=1e-3), float(jnp.max(jnp.abs(out4 - ref4)))

    print("KERNEL_OK")
</pallas_src>

<mosaic_0001>
module attributes {stable_mosaic.version = 11 : i64} {
  func.func @_score_regressor_kernel(%arg0: i32, %arg1: i32, %arg2: memref<8x8x128xf32, #tpu.memory_space<vmem>>, %arg3: memref<8x8x128xf32, #tpu.memory_space<vmem>>, %arg4: memref<1x128xf32, #tpu.memory_space<vmem>>, %arg5: memref<1x1xf32, #tpu.memory_space<smem>>, %arg6: memref<8x1xf32, #tpu.memory_space<vmem>>, %arg7: memref<8x128xf32, #tpu.memory_space<vmem>>, %arg8: memref<8x128xf32, #tpu.memory_space<vmem>>, %arg9: memref<8x128xf32, #tpu.memory_space<vmem>>) attributes {dimension_semantics = [#tpu.dimension_semantics<parallel>, #tpu.dimension_semantics<arbitrary>], iteration_bounds = array<i64: 1, 1>, scalar_prefetch = 0 : i64, scratch_operands = 3 : i64, tpu.core_type = #tpu.core_type<tc>, window_params = [{transform_indices = @transform_0, window_bounds = array<i64: 8, 8, 128>}, {transform_indices = @transform_1, window_bounds = array<i64: 8, 8, 128>}, {pipeline_mode = #tpu.pipeline_mode<synchronous>, transform_indices = @transform_2, window_bounds = array<i64: 1, 128>}, {transform_indices = @transform_3, window_bounds = array<i64: 1, 1>}, {transform_indices = @transform_4, window_bounds = array<i64: 8, 1>}]} {
    %c0_i32 = arith.constant 0 : i32
    %0 = arith.cmpi eq, %arg1, %c0_i32 : i32
    %1 = arith.extui %0 : i1 to i32
    %c0_i32_0 = arith.constant 0 : i32
    %2 = arith.cmpi ne, %1, %c0_i32_0 : i32
    scf.if %2 {
      %cst_24 = arith.constant 0xFF800000 : f32
      %30 = vector.broadcast %cst_24 : f32 to vector<8x128xf32>
      %c0_25 = arith.constant 0 : index
      %c0_26 = arith.constant 0 : index
      %31 = vector.load %arg7[%c0_25, %c0_26] : memref<8x128xf32, #tpu.memory_space<vmem>>, vector<8x128xf32>
      tpu.vector_store %arg7[%c0_25, %c0_26], %30 {strides = array<i32>} : memref<8x128xf32, #tpu.memory_space<vmem>>, vector<8x128xf32>,
      %cst_27 = arith.constant 0.000000e+00 : f32
      %32 = vector.broadcast %cst_27 : f32 to vector<8x128xf32>
      %c0_28 = arith.constant 0 : index
      %c0_29 = arith.constant 0 : index
      %33 = vector.load %arg8[%c0_28, %c0_29] : memref<8x128xf32, #tpu.memory_space<vmem>>, vector<8x128xf32>
      tpu.vector_store %arg8[%c0_28, %c0_29], %32 {strides = array<i32>} : memref<8x128xf32, #tpu.memory_space<vmem>>, vector<8x128xf32>,
      %cst_30 = arith.constant 0.000000e+00 : f32
      %34 = vector.broadcast %cst_30 : f32 to vector<8x128xf32>
      %c0_31 = arith.constant 0 : index
      %c0_32 = arith.constant 0 : index
      %35 = vector.load %arg9[%c0_31, %c0_32] : memref<8x128xf32, #tpu.memory_space<vmem>>, vector<8x128xf32>
      tpu.vector_store %arg9[%c0_31, %c0_32], %34 {strides = array<i32>} : memref<8x128xf32, #tpu.memory_space<vmem>>, vector<8x128xf32>,
    } else {
    }
    %c0 = arith.constant 0 : index
    %c0_1 = arith.constant 0 : index
    %c0_2 = arith.constant 0 : index
    %3 = vector.load %arg3[%c0, %c0_1, %c0_2] : memref<8x8x128xf32, #tpu.memory_space<vmem>>, vector<8x8x128xf32>
    %c0_3 = arith.constant 0 : index
    %c0_4 = arith.constant 0 : index
    %c0_5 = arith.constant 0 : index
    %4 = vector.load %arg2[%c0_3, %c0_4, %c0_5] : memref<8x8x128xf32, #tpu.memory_space<vmem>>, vector<8x8x128xf32>
    %cst = arith.constant dense<0xFF800000> : vector<8x128xf32>
    %5 = vector.multi_reduction <maximumf>, %3, %cst [1] : vector<8x8x128xf32> to vector<8x128xf32>
    %c0_6 = arith.constant 0 : index
    %c0_7 = arith.constant 0 : index
    %6 = vector.load %arg7[%c0_6, %c0_7] : memref<8x128xf32, #tpu.memory_space<vmem>>, vector<8x128xf32>
    %7 = arith.maximumf %6, %5 : vector<8x128xf32>
    %c0_8 = arith.constant 0 : index
    %c0_9 = arith.constant 0 : index
    %8 = vector.load %arg7[%c0_8, %c0_9] : memref<8x128xf32, #tpu.memory_space<vmem>>, vector<8x128xf32>
    %9 = arith.subf %8, %7 : vector<8x128xf32>
    %10 = math.exp %9 : vector<8x128xf32>
    %11 = vector.shape_cast %7 : vector<8x128xf32> to vector<8x1x128xf32>
    %12 = vector.broadcast %11 : vector<8x1x128xf32> to vector<8x8x128xf32>
    %13 = arith.subf %3, %12 : vector<8x8x128xf32>
    %14 = math.exp %13 : vector<8x8x128xf32>
    %c0_10 = arith.constant 0 : index
    %c0_11 = arith.constant 0 : index
    %15 = vector.load %arg8[%c0_10, %c0_11] : memref<8x128xf32, #tpu.memory_space<vmem>>, vector<8x128xf32>
    %16 = arith.mulf %10, %15 : vector<8x128xf32>
    %cst_12 = arith.constant dense<0.000000e+00> : vector<8x128xf32>
    %17 = vector.multi_reduction <add>, %14, %cst_12 [1] : vector<8x8x128xf32> to vector<8x128xf32>
    %18 = arith.addf %16, %17 : vector<8x128xf32>
    %c0_13 = arith.constant 0 : index
    %c0_14 = arith.constant 0 : index
    %19 = vector.load %arg8[%c0_13, %c0_14] : memref<8x128xf32, #tpu.memory_space<vmem>>, vector<8x128xf32>
    tpu.vector_store %arg8[%c0_13, %c0_14], %18 {strides = array<i32>} : memref<8x128xf32, #tpu.memory_space<vmem>>, vector<8x128xf32>,
    %c0_15 = arith.constant 0 : index
    %c0_16 = arith.constant 0 : index
    %20 = vector.load %arg9[%c0_15, %c0_16] : memref<8x128xf32, #tpu.memory_space<vmem>>, vector<8x128xf32>
    %21 = arith.mulf %10, %20 : vector<8x128xf32>
    %22 = arith.mulf %4, %14 : vector<8x8x128xf32>
    %cst_17 = arith.constant dense<0.000000e+00> : vector<8x128xf32>
    %23 = vector.multi_reduction <add>, %22, %cst_17 [1] : vector<8x8x128xf32> to vector<8x128xf32>
    %24 = arith.addf %21, %23 : vector<8x128xf32>
    %c0_18 = arith.constant 0 : index
    %c0_19 = arith.constant 0 : index
    %25 = vector.load %arg9[%c0_18, %c0_19] : memref<8x128xf32, #tpu.memory_space<vmem>>, vector<8x128xf32>
    tpu.vector_store %arg9[%c0_18, %c0_19], %24 {strides = array<i32>} : memref<8x128xf32, #tpu.memory_space<vmem>>, vector<8x128xf32>,
    %c0_20 = arith.constant 0 : index
    %c0_21 = arith.constant 0 : index
    %26 = vector.load %arg7[%c0_20, %c0_21] : memref<8x128xf32, #tpu.memory_space<vmem>>, vector<8x128xf32>
    tpu.vector_store %arg7[%c0_20, %c0_21], %7 {strides = array<i32>} : memref<8x128xf32, #tpu.memory_space<vmem>>, vector<8x128xf32>,
    %c0_i32_22 = arith.constant 0 : i32
    %27 = arith.cmpi eq, %arg1, %c0_i32_22 : i32
    %28 = arith.extui %27 : i1 to i32
    %c0_i32_23 = arith.constant 0 : i32
    %29 = arith.cmpi ne, %28, %c0_i32_23 : i32
    scf.if %29 {
      %c0_24 = arith.constant 0 : index
      %c0_25 = arith.constant 0 : index
      %30 = vector.load %arg8[%c0_24, %c0_25] : memref<8x128xf32, #tpu.memory_space<vmem>>, vector<8x128xf32>
      %31 = tpu.reciprocal %30 {approx = true} : vector<8x128xf32> -> vector<8x128xf32>
      %c0_26 = arith.constant 0 : index
      %c0_27 = arith.constant 0 : index
      %32 = vector.load %arg4[%c0_26, %c0_27] : memref<1x128xf32, #tpu.memory_space<vmem>>, vector<1x128xf32>
      %c0_28 = arith.constant 0 : index
      %c0_29 = arith.constant 0 : index
      %33 = vector.load %arg9[%c0_28, %c0_29] : memref<8x128xf32, #tpu.memory_space<vmem>>, vector<8x128xf32>
      %34 = vector.broadcast %32 : vector<1x128xf32> to vector<8x128xf32>
      %35 = arith.mulf %34, %31 : vector<8x128xf32>
      %36 = arith.mulf %33, %35 : vector<8x128xf32>
      %cst_30 = arith.constant dense<0.000000e+00> : vector<8xf32>
      %37 = vector.multi_reduction <add>, %36, %cst_30 [1] : vector<8x128xf32> to vector<8xf32>
      %38 = vector.shape_cast %37 : vector<8xf32> to vector<8x1xf32>
      %c0_31 = arith.constant 0 : index
      %c0_32 = arith.constant 0 : index
      %39 = memref.load %arg5[%c0_31, %c0_32] : memref<1x1xf32, #tpu.memory_space<smem>>
      %40 = vector.broadcast %39 : f32 to vector<8x1xf32>
      %41 = arith.addf %38, %40 : vector<8x1xf32>
      %c0_33 = arith.constant 0 : index
      %c0_34 = arith.constant 0 : index
      %42 = vector.load %arg6[%c0_33, %c0_34] : memref<8x1xf32, #tpu.memory_space<vmem>>, vector<8x1xf32>
      tpu.vector_store %arg6[%c0_33, %c0_34], %41 {strides = array<i32>} : memref<8x1xf32, #tpu.memory_space<vmem>>, vector<8x1xf32>,
    } else {
    }
    return
  }
  func.func @transform_0(%arg0: i32, %arg1: i32) -> (i32, i32, i32) {
    %c0_i32 = arith.constant 0 : i32
    %c0_i32_0 = arith.constant 0 : i32
    return %arg0, %arg1, %c0_i32 : i32, i32, i32
  }
  func.func @transform_1(%arg0: i32, %arg1: i32) -> (i32, i32, i32) {
    %c0_i32 = arith.constant 0 : i32
    %c0_i32_0 = arith.constant 0 : i32
    return %arg0, %arg1, %c0_i32 : i32, i32, i32
  }
  func.func @transform_2(%arg0: i32, %arg1: i32) -> (i32, i32) {
    %c0_i32 = arith.constant 0 : i32
    %c0_i32_0 = arith.constant 0 : i32
    %c0_i32_1 = arith.constant 0 : i32
    return %c0_i32, %c0_i32_0 : i32, i32
  }
  func.func @transform_3(%arg0: i32, %arg1: i32) -> (i32, i32) {
    %c0_i32 = arith.constant 0 : i32
    %c0_i32_0 = arith.constant 0 : i32
    %c0_i32_1 = arith.constant 0 : i32
    return %c0_i32, %c0_i32_0 : i32, i32
  }
  func.func @transform_4(%arg0: i32, %arg1: i32) -> (i32, i32) {
    %c0_i32 = arith.constant 0 : i32
    %c0_i32_0 = arith.constant 0 : i32
    return %arg0, %c0_i32 : i32, i32
  }
}

</mosaic_0001>

<bundles_post_ra>
// kernel: tpu_custom_call.1
= control target key start
LH: loop header
LB: loop body
LE: loop exit
PB: predicated region body
PF: predicated region fallthrough
CT: control target
= control target key end

     0   :  { %10 = vsyncpa [#allocation7], 0  ;;  %s657_s0 = inlined_call_operand.hbm [shape: f32[8,8,128], index: 0, kind: input, shape index: {}]   ;;  %s658_s1 = inlined_call_operand.hbm [shape: f32[8,8,128], index: 1, kind: input, shape index: {}]   ;;  %s659_s2 = inlined_call_operand.vmem [shape: f32[1,128], index: 2, kind: input, shape index: {}]   ;;  %s660_s3 = inlined_call_operand.<no memory space> [shape: f32[1,1], index: 3, kind: input, shape index: {}]   ;;  %s661_s4 = inlined_call_operand.vmem [shape: f32[8,1], index: 4, kind: output, shape index: {}]  }
   0x1   :  { %11 = vsyncpa [#allocation9], 0  ;;  %s506_s15 = smov [#allocation6]   ;;  %s458_s19 = scalar_lea.hbm %s657_s0, 1024 }
   0x2   :  { %s17_s16 = sshll.u32 %s506_s15, 4  ;;  %p459_p0 = scmp.ne.s32.totalorder %s657_s0, %s458_s19  ;;  %s18_s16 = int_to_ptr.vmem [resolvable:$true] %s17_s16 }
   0x3   :  { %p462_p1 = scmp.lt.u32.totalorder %s458_s19, %s657_s0 }
   0x5   :  { %p464_p2 = pnand %p462_p1, %p459_p0 }
   0x7   :  { %467 = shalt.err (!%p464_p2)
}
   0x8   :  { %s468_s24 = scalar_lea.vmem %s18_s16, 1024  ;;  %p473_p4 = scmp.lt.s32.totalorder %s18_s16, %s18_s16 }
   0x9   :  { %p469_p3 = scmp.ne.s32.totalorder %s18_s16, %s468_s24  ;;  %p474_p5 = scmp.lt.s32.totalorder %s468_s24, %s468_s24 }
   0xb   :  { %p475_p6 = por %p474_p5, %p473_p4 }
   0xd   :  { %p476_p7 = pnand %p475_p6, %p469_p3 }
   0xf   :  { %479 = shalt.err (!%p476_p7)
}
  0x10   :  { %s507_s25 = smov 128   ;;  %s508_s26 = smov 8  }
  0x11   :  { %23 = dma.hbm_to_vmem [thread:$0]  %s657_s0, 1024, %s18_s16, [#allocation7], %s507_s25, %s507_s25, %s508_s26  }
  0x12   :  { %s509_s29 = smov [#allocation8]   ;;  %s480_s7 = scalar_lea.hbm %s658_s1, 1024 }
  0x13   :  { %s29_s30 = sshll.u32 %s509_s29, 4  ;;  %p481_p8 = scmp.ne.s32.totalorder %s658_s1, %s480_s7  ;;  %s30_s30 = int_to_ptr.vmem [resolvable:$true] %s29_s30 }
  0x14   :  { %p484_p9 = scmp.lt.u32.totalorder %s480_s7, %s658_s1 }
  0x16   :  { %p486_p10 = pnand %p484_p9, %p481_p8 }
  0x18   :  { %489 = shalt.err (!%p486_p10)
}
  0x19   :  { %s490_s12 = scalar_lea.vmem %s30_s30, 1024  ;;  %p495_p12 = scmp.lt.s32.totalorder %s30_s30, %s30_s30 }
  0x1a   :  { %p491_p11 = scmp.ne.s32.totalorder %s30_s30, %s490_s12  ;;  %p496_p13 = scmp.lt.s32.totalorder %s490_s12, %s490_s12 }
  0x1c   :  { %p497_p0 = por %p496_p13, %p495_p12 }
  0x1e   :  { %p498_p1 = pnand %p497_p0, %p491_p11 }
  0x20   :  { %501 = shalt.err (!%p498_p1)
}
  0x21   :  { %35 = dma.hbm_to_vmem [thread:$0]  %s658_s1, 1024, %s30_s30, [#allocation9], %s507_s25, %s507_s25, %s508_s26  }
  0x22   :  { %502 = dma.done.wait [#allocation7], 1024  }
  0x23   :  { %503 = vsyncadd [#allocation7], 4294966272 }
  0x24   :  { %504 = dma.done.wait [#allocation9], 1024  }
  0x25   :  { %505 = vsyncadd [#allocation9], 4294966272  ;;  %v510_v0 = vmov 1966171168   ;;  %v562_v2 = vld [vmem:[#allocation8] sm:$0xff]  ;;  %v564_v3 = vld [vmem:[#allocation8 + $0x8] sm:$0xff]  ;;  %v150_v11 = vlaneseq }
  0x26   :  { %v560_v1 = vunpack.c.l.s4 %v510_v0  ;;  %v566_v4 = vld [vmem:[#allocation8 + $0x10] sm:$0xff]  ;;  %v568_v5 = vld [vmem:[#allocation8 + $0x18] sm:$0xff]  ;;  %v570_v6 = vld [vmem:[#allocation8 + $0x20] sm:$0xff]  ;;  %v69_v8 = vrot.slane %v562_v2, 4  ;;  %v75_v9 = vrot.slane %v564_v3, 4  ;;  %vm126_vm0 = vcmask 1041409  }
  0x27   :  { %v572_v7 = vld [vmem:[#allocation8 + $0x28] sm:$0xff]  ;;  %v81_v10 = vrot.slane %v566_v4, 4  ;;  %v577_v12 = vld [vmem:[#allocation8 + $0x30] sm:$0xff]  ;;  %v579_v13 = vld [vmem:[#allocation8 + $0x38] sm:$0xff]  ;;  %v87_v14 = vrot.slane %v568_v5, 4  ;;  %v93_v15 = vrot.slane %v570_v6, 4 }
  0x28   :  { %v99_v16 = vrot.slane %v572_v7, 4  ;;  %v149_v17 = vunpack.c.0.s8 %v560_v1  ;;  %v70_v18 = vmax.f32 %v562_v2, %v69_v8  ;;  %v76_v19 = vmax.f32 %v564_v3, %v75_v9 }
  0x29   :  { %v82_v20 = vmax.f32 %v566_v4, %v81_v10  ;;  %v105_v21 = vrot.slane %v577_v12, 4  ;;  %vm128_vm1 = vcmask 1042434   ;;  %v88_v22 = vmax.f32 %v568_v5, %v87_v14 }
  0x2a   :  { %v94_v23 = vmax.f32 %v570_v6, %v93_v15  ;;  %v100_v24 = vmax.f32 %v572_v7, %v99_v16  ;;  %v111_v25 = vrot.slane %v579_v13, 4  ;;  %vm130_vm2 = vcmask 1043459  }
  0x2b   :  { %v71_v26 = vrot.slane %v70_v18, 2  ;;  %v77_v27 = vrot.slane %v76_v19, 2  ;;  %v83_v28 = vrot.slane %v82_v20, 2  ;;  %v106_v29 = vmax.f32 %v577_v12, %v105_v21 }
  0x2c   :  { %v89_v30 = vrot.slane %v88_v22, 2  ;;  %v95_v31 = vrot.slane %v94_v23, 2  ;;  %v101_v32 = vrot.slane %v100_v24, 2  ;;  %v112_v33 = vmax.f32 %v579_v13, %v111_v25 }
  0x2d   :  { %v72_v34 = vmax.f32 %v70_v18, %v71_v26  ;;  %v78_v35 = vmax.f32 %v76_v19, %v77_v27  ;;  %v84_v36 = vmax.f32 %v82_v20, %v83_v28  ;;  %v107_v37 = vrot.slane %v106_v29, 2 }
  0x2e   :  { %v90_v38 = vmax.f32 %v88_v22, %v89_v30  ;;  %v96_v39 = vmax.f32 %v94_v23, %v95_v31  ;;  %v102_v40 = vmax.f32 %v100_v24, %v101_v32  ;;  %v113_v41 = vrot.slane %v112_v33, 2 }
  0x2f   :  { %v73_v42 = vrot.slane %v72_v34, 1  ;;  %v79_v43 = vrot.slane %v78_v35, 1  ;;  %v85_v44 = vrot.slane %v84_v36, 1  ;;  %v108_v45 = vmax.f32 %v106_v29, %v107_v37 }
  0x30   :  { %v91_v46 = vrot.slane %v90_v38, 1  ;;  %v97_v47 = vrot.slane %v96_v39, 1  ;;  %v103_v48 = vrot.slane %v102_v40, 1  ;;  %v114_v49 = vmax.f32 %v112_v33, %v113_v41 }
  0x31   :  { %v74_v50 = vmax.f32 %v72_v34, %v73_v42  ;;  %v80_v51 = vmax.f32 %v78_v35, %v79_v43  ;;  %v86_v52 = vmax.f32 %v84_v36, %v85_v44  ;;  %v109_v53 = vrot.slane %v108_v45, 1 }
  0x32   :  { %v92_v54 = vmax.f32 %v90_v38, %v91_v46  ;;  %v98_v55 = vmax.f32 %v96_v39, %v97_v47  ;;  %v115_v56 = vrot.slane %v114_v49, 1  ;;  %v151_v57 = vshrl.u32 %v150_v11, 7 }
  0x33   :  { %v104_v58 = vmax.f32 %v102_v40, %v103_v48  ;;  %v127_v59 = vsel %vm126_vm0, %v80_v51, %v74_v50  ;;  %vm132_vm3 = vcmask 1044484   ;;  %v110_v60 = vmax.f32 %v108_v45, %v109_v53  ;;  %v63_v50 = vld [vmem:[#allocation6 + $0x10] sm:$0xff]  ;;  %v64_v53 = vld [vmem:[#allocation6 + $0x18] sm:$0xff] }
  0x34   :  { %v129_v61 = vsel %vm128_vm1, %v86_v52, %v127_v59  ;;  %vm134_vm4 = vcmask 1045509   ;;  %v116_v62 = vmax.f32 %v114_v49, %v115_v56  ;;  %vm136_vm5 = vcmask 1046534   ;;  %v62_v49 = vld [vmem:[#allocation6 + $0x8] sm:$0xff] }
  0x35   :  { %v131_v63 = vsel %vm130_vm2, %v92_v54, %v129_v61  ;;  %vm138_vm6 = vcmask 1047559   ;;  %v152_v1 = vsub.s32 %v149_v17, %v151_v57  ;;  %v197_v15 = vsub.s32 0, %v151_v57 }
  0x36   :  { %v133_v0 = vsel %vm132_vm3, %v98_v55, %v131_v63  ;;  %v65_v55 = vld [vmem:[#allocation6 + $0x20] sm:$0xff]  ;;  %vm424_vm7 = vcmask 7168  }
  0x37   :  { %v135_v8 = vsel %vm134_vm4, %v104_v58, %v133_v0 }
  0x38   :  { %v137_v9 = vsel %vm136_vm5, %v110_v60, %v135_v8 }
  0x39   :  { %v139_v10 = vsel %vm138_vm6, %v116_v62, %v137_v9 }
  0x3a   :  { %v146_v11 = vcombine.high %v139_v10, %v139_v10  ;;  %v153_v14 = vrot.slane %v139_v10, %v152_v1  ;;  %v142_v20 = vsub.f32 -inf, %v139_v10 }
  0x3c   :  { %v160_v16 = vrot.slane %v146_v11, %v152_v1  ;;  %v161_v18 = vcombine.high %v153_v14, %v153_v14  ;;  %v169_v19 = vrot.slane %v153_v14, %v152_v1  ;;  %v143_v29 = vmul.f32 1.442695, %v142_v20 }
  0x3e   :  { %v162_v21 = vcombine.high %v160_v16, %v160_v16  ;;  %v176_v22 = vrot.slane %v160_v16, %v152_v1  ;;  %v183_v23 = vrot.slane %v161_v18, %v152_v1  ;;  %v191_v24 = vcombine.high %v169_v19, %v169_v19 }
  0x3f   :  { %v198_v25 = vrot.slane %v169_v19, %v197_v15 }
  0x40   :  { %v190_v26 = vrot.slane %v162_v21, %v152_v1  ;;  %v192_v17 = vcombine.high %v176_v22, %v176_v22  ;;  %v193_v27 = vcombine.high %v183_v23, %v183_v23  ;;  %v202_v28 = vrot.slane %v183_v23, %v197_v15  ;;  %v66_v1 = vld [vmem:[#allocation6 + $0x28] sm:$0xff] }
  0x41   :  { %v206_v30 = vrot.slane %v191_v24, %v197_v15  ;;  %v214_v31 = vrot.slane %v176_v22, %v197_v15  ;;  %v235_v32 = vsub.f32 %v562_v2, %v198_v25 }
  0x42   :  { %v194_v33 = vcombine.high %v190_v26, %v190_v26  ;;  %v210_v34 = vrot.slane %v193_v27, %v197_v15  ;;  %v218_v35 = vrot.slane %v190_v26, %v197_v15  ;;  %v222_v36 = vrot.slane %v192_v17, %v197_v15 }
  0x43   :  { %v236_v37 = vsub.f32 %v564_v3, %v202_v28  ;;  %v237_v38 = vsub.f32 %v566_v4, %v206_v30  ;;  %v239_v39 = vsub.f32 %v570_v6, %v214_v31  ;;  %v243_v40 = vmul.f32 1.442695, %v235_v32 }
  0x44   :  { %v226_v41 = vrot.slane %v194_v33, %v197_v15  ;;  %v238_v42 = vsub.f32 %v568_v5, %v210_v34  ;;  %v240_v43 = vsub.f32 %v572_v7, %v218_v35  ;;  %v241_v44 = vsub.f32 %v577_v12, %v222_v36  ;;  %v61_v5 = vld [vmem:[#allocation6] sm:$0xff]  ;;  %v67_v33 = vld [vmem:[#allocation6 + $0x30] sm:$0xff] }
  0x45   :  { %438 = vpow2.f32 %v243_v40  ;;  %v245_v2 = vmul.f32 1.442695, %v236_v37  ;;  %v247_v45 = vmul.f32 1.442695, %v237_v38  ;;  %v251_v3 = vmul.f32 1.442695, %v239_v39 }
  0x46   :  { %440 = vpow2.f32 %v143_v29  ;;  %v242_v46 = vsub.f32 %v579_v13, %v226_v41  ;;  %v249_v47 = vmul.f32 1.442695, %v238_v42  ;;  %v253_v4 = vmul.f32 1.442695, %v240_v43  ;;  %v68_v42 = vld [vmem:[#allocation6 + $0x38] sm:$0xff] }
  0x47   :  { %442 = vpow2.f32 %v245_v2  ;;  %v255_v6 = vmul.f32 1.442695, %v241_v44 }
  0x48   :  { %444 = vpow2.f32 %v247_v45  ;;  %v257_v48 = vmul.f32 1.442695, %v242_v46 }
  0x49   :  { %446 = vpow2.f32 %v249_v47 }
  0x4a   :  { %448 = vpow2.f32 %v251_v3 }
  0x4b   :  { %450 = vpow2.f32 %v253_v4 }
  0x4c   :  { %452 = vpow2.f32 %v255_v6 }
  0x4d   :  { %454 = vpow2.f32 %v257_v48 }
  0x4f   :  { %v439_v7 = vpop.eup %438 }
  0x50   :  { %v441_v12 = vpop.eup %440  ;;  %v261_v51 = vrot.slane %v439_v7, 4  ;;  %v329_v52 = vmul.f32 %v439_v7, %v61_v5 }
  0x51   :  { %v443_v13 = vpop.eup %442  ;;  %v610_v60 = vmul.f32 0.0, %v441_v12 }
  0x52   :  { %v445_v54 = vpop.eup %444  ;;  %v262_v56 = vadd.f32 %v439_v7, %v261_v51  ;;  %v267_v57 = vrot.slane %v443_v13, 4  ;;  %v337_v58 = vrot.slane %v329_v52, 4  ;;  %v612_v62 = vmul.f32 %v443_v13, %v62_v49 }
  0x53   :  { %v447_v59 = vpop.eup %446  ;;  %v273_v61 = vrot.slane %v445_v54, 4  ;;  %v614_v63 = vmul.f32 %v445_v54, %v63_v50 }
  0x54   :  { %v449_v0 = vpop.eup %448  ;;  %v263_v8 = vrot.slane %v262_v56, 2  ;;  %v268_v9 = vadd.f32 %v443_v13, %v267_v57  ;;  %v279_v10 = vrot.slane %v447_v59, 4  ;;  %v616_v11 = vmul.f32 %v447_v59, %v64_v53 }
  0x55   :  { %v451_v14 = vpop.eup %450  ;;  %v274_v15 = vadd.f32 %v445_v54, %v273_v61  ;;  %v285_v16 = vrot.slane %v449_v0, 4  ;;  %v618_v18 = vmul.f32 %v449_v0, %v65_v55  ;;  %v338_v19 = vadd.f32 %v337_v58, %v329_v52 }
  0x56   :  { %v453_v20 = vpop.eup %452  ;;  %v264_v21 = vadd.f32 %v263_v8, %v262_v56  ;;  %v269_v22 = vrot.slane %v268_v9, 2  ;;  %v280_v23 = vadd.f32 %v447_v59, %v279_v10  ;;  %v291_v24 = vrot.slane %v451_v14, 4 }
  0x57   :  { %v455_v25 = vpop.eup %454  ;;  %v275_v26 = vrot.slane %v274_v15, 2  ;;  %v286_v17 = vadd.f32 %v449_v0, %v285_v16  ;;  %v297_v27 = vrot.slane %v453_v20, 4  ;;  %v620_v28 = vmul.f32 %v451_v14, %v66_v1 }
  0x58   :  { %v265_v29 = vrot.slane %v264_v21, 1  ;;  %v270_v30 = vadd.f32 %v269_v22, %v268_v9  ;;  %v281_v31 = vrot.slane %v280_v23, 2  ;;  %v292_v32 = vadd.f32 %v451_v14, %v291_v24 }
  0x59   :  { %v276_v34 = vadd.f32 %v275_v26, %v274_v15  ;;  %v287_v35 = vrot.slane %v286_v17, 2  ;;  %v298_v36 = vadd.f32 %v453_v20, %v297_v27  ;;  %v303_v37 = vrot.slane %v455_v25, 4 }
  0x5a   :  { %v266_v38 = vadd.f32 %v265_v29, %v264_v21  ;;  %v271_v39 = vrot.slane %v270_v30, 1  ;;  %v282_v40 = vadd.f32 %v281_v31, %v280_v23  ;;  %v293_v41 = vrot.slane %v292_v32, 2 }
  0x5b   :  { %v277_v43 = vrot.slane %v276_v34, 1  ;;  %v288_v44 = vadd.f32 %v287_v35, %v286_v17  ;;  %v299_v2 = vrot.slane %v298_v36, 2  ;;  %v304_v45 = vadd.f32 %v455_v25, %v303_v37 }
  0x5c   :  { %v272_v46 = vadd.f32 %v271_v39, %v270_v30  ;;  %v283_v47 = vrot.slane %v282_v40, 1  ;;  %v294_v3 = vadd.f32 %v293_v41, %v292_v32  ;;  %v335_v4 = vmul.f32 %v453_v20, %v67_v33 }
  0x5d   :  { %v278_v6 = vadd.f32 %v277_v43, %v276_v34  ;;  %v289_v48 = vrot.slane %v288_v44, 1  ;;  %v300_v5 = vadd.f32 %v299_v2, %v298_v36  ;;  %v305_v7 = vrot.slane %v304_v45, 2 }
  0x5e   :  { %v284_v12 = vadd.f32 %v283_v47, %v282_v40  ;;  %v295_v49 = vrot.slane %v294_v3, 1  ;;  %v317_v50 = vsel %vm126_vm0, %v272_v46, %v266_v38  ;;  %v336_v51 = vmul.f32 %v455_v25, %v68_v42 }
  0x5f   :  { %v290_v52 = vadd.f32 %v289_v48, %v288_v44  ;;  %v301_v13 = vrot.slane %v300_v5, 1  ;;  %v306_v53 = vadd.f32 %v305_v7, %v304_v45  ;;  %v318_v54 = vsel %vm128_vm1, %v278_v6, %v317_v50 }
  0x60   :  { %v296_v55 = vadd.f32 %v295_v49, %v294_v3  ;;  %v319_v56 = vsel %vm130_vm2, %v284_v12, %v318_v54  ;;  %v339_v57 = vrot.slane %v338_v19, 2  ;;  %v343_v58 = vrot.slane %v612_v62, 4 }
  0x61   :  { %v302_v59 = vadd.f32 %v301_v13, %v300_v5  ;;  %v307_v61 = vrot.slane %v306_v53, 1  ;;  %v320_v0 = vsel %vm132_vm3, %v290_v52, %v319_v56  ;;  %v349_v1 = vrot.slane %v614_v63, 4  ;;  %v432_v52 = vld [vmem:[%s659_s2] ss:$0 sm:$0xff] }
  0x62   :  { %v321_v8 = vsel %vm134_vm4, %v296_v55, %v320_v0  ;;  %v340_v9 = vadd.f32 %v339_v57, %v338_v19  ;;  %v344_v10 = vadd.f32 %v343_v58, %v612_v62  ;;  %v355_v14 = vrot.slane %v616_v11, 4 }
  0x63   :  { %v308_v15 = vadd.f32 %v307_v61, %v306_v53  ;;  %v322_v16 = vsel %vm136_vm5, %v302_v59, %v321_v8  ;;  %v350_v20 = vadd.f32 %v349_v1, %v614_v63  ;;  %v361_v21 = vrot.slane %v618_v18, 4 }
  0x64   :  { %v341_v22 = vrot.slane %v340_v9, 1  ;;  %v345_v23 = vrot.slane %v344_v10, 2  ;;  %v356_v24 = vadd.f32 %v355_v14, %v616_v11  ;;  %v367_v25 = vrot.slane %v620_v28, 4 }
  0x65   :  { %v323_v26 = vsel %vm138_vm6, %v308_v15, %v322_v16  ;;  %v351_v19 = vrot.slane %v350_v20, 2  ;;  %v362_v62 = vadd.f32 %v361_v21, %v618_v18  ;;  %v373_v17 = vrot.slane %v335_v4, 4 }
  0x66   :  { %v325_v27 = vadd.f32 %v323_v26, %v610_v60  ;;  %v342_v29 = vadd.f32 %v341_v22, %v340_v9  ;;  %v346_v30 = vadd.f32 %v345_v23, %v344_v10  ;;  %v357_v31 = vrot.slane %v356_v24, 2 }
  0x67   :  { %v352_v63 = vadd.f32 %v351_v19, %v350_v20  ;;  %v363_v32 = vrot.slane %v362_v62, 2  ;;  %v368_v33 = vadd.f32 %v367_v25, %v620_v28  ;;  %v374_v34 = vadd.f32 %v373_v17, %v335_v4 }
  0x68   :  { %v347_v35 = vrot.slane %v346_v30, 1  ;;  %v358_v11 = vadd.f32 %v357_v31, %v356_v24  ;;  %v379_v36 = vrot.slane %v336_v51, 4  ;;  %456 = vrcp.f32 %v325_v27 }
  0x69   :  { %v353_v37 = vrot.slane %v352_v63, 1  ;;  %v364_v38 = vadd.f32 %v363_v32, %v362_v62  ;;  %v369_v39 = vrot.slane %v368_v33, 2  ;;  %v375_v40 = vrot.slane %v374_v34, 2 }
  0x6a   :  { %v348_v18 = vadd.f32 %v347_v35, %v346_v30  ;;  %v359_v41 = vrot.slane %v358_v11, 1  ;;  %v380_v42 = vadd.f32 %v379_v36, %v336_v51  ;;  %v422_v61 = vstv %s660_s3 }
  0x6b   :  { %v354_v43 = vadd.f32 %v353_v37, %v352_v63  ;;  %v365_v44 = vrot.slane %v364_v38, 1  ;;  %v370_v2 = vadd.f32 %v369_v39, %v368_v33  ;;  %v376_v45 = vadd.f32 %v375_v40, %v374_v34 }
  0x6c   :  { %v360_v46 = vadd.f32 %v359_v41, %v358_v11  ;;  %v381_v47 = vrot.slane %v380_v42, 2  ;;  %v393_v28 = vsel %vm126_vm0, %v348_v18, %v342_v29 }
  0x6d   :  { %v366_v3 = vadd.f32 %v365_v44, %v364_v38  ;;  %v371_v4 = vrot.slane %v370_v2, 1  ;;  %v377_v6 = vrot.slane %v376_v45, 1  ;;  %v394_v48 = vsel %vm128_vm1, %v354_v43, %v393_v28 }
  0x6e   :  { %v382_v5 = vadd.f32 %v381_v47, %v380_v42  ;;  %v395_v7 = vsel %vm130_vm2, %v360_v46, %v394_v48 }
  0x6f   :  { %v372_v12 = vadd.f32 %v371_v4, %v370_v2  ;;  %v378_v49 = vadd.f32 %v377_v6, %v376_v45  ;;  %v396_v50 = vsel %vm132_vm3, %v366_v3, %v395_v7 }
  0x70   :  { %v383_v51 = vrot.slane %v382_v5, 1 }
  0x71   :  { %v397_v13 = vsel %vm134_vm4, %v372_v12, %v396_v50 }
  0x72   :  { %v457_v53 = vpop.eup %456  ;;  %v384_v54 = vadd.f32 %v383_v51, %v382_v5  ;;  %v398_v55 = vsel %vm136_vm5, %v378_v49, %v397_v13 }
  0x73   :  { %v417_v56 = vmul.f32 %v457_v53, %v432_v52 }
  0x74   :  { %v399_v57 = vsel %vm138_vm6, %v384_v54, %v398_v55 }
  0x75   :  { %v401_v58 = vadd.f32 %v399_v57, %v610_v60 }
  0x77   :  { %v418_v59 = vmul.f32 %v417_v56, %v401_v58 }
  0x79   :  { %419 = vadd.xlane.f32.xlu0 %v418_v59 }
 0x106   :  { %v420_v0 = vpop.xlane.xlu0 %419 }
 0x107   :  { %v423_v1 = vadd.f32 %v422_v61, %v420_v0 }
 0x109   :  { %425 = vst.msk [vmem:[%s661_s4] sm:$0xff] %vm424_vm7, %v423_v1 }
 0x10a   :  { %430 = vsyncpa [#allocation7], 1 }
 0x10b   :  { %431 = vsyncpa [#allocation9], 1 }

</bundles_post_ra>
